<compile_context>
chip_gen: v7x
topology: tpu7x:2x2x1
jax: 0.10.0
libtpu: 0.0.40
codegen_flags: <defaults>
</compile_context>

<pallas_src>
import math
import functools

import numpy as np

import jax
import jax.numpy as jnp
from jax.experimental import pallas as pl
from jax.experimental.pallas import tpu as pltpu


def _round_up(x, m):
    return ((x + m - 1) // m) * m


def _aam_loss_kernel(cosine_ref, label_ref, loss_ref, m_sc, s_sc, t_sc, *,
                     c_tile, cos_m, sin_m, th, mmm, scale, easy_margin):
    c_idx = pl.program_id(1)
    n_c = pl.num_programs(1)

    # -------- init running stats at the first class tile --------------------
    @pl.when(c_idx == 0)
    def _():
        m_sc[...] = jnp.full_like(m_sc, -jnp.inf)
        s_sc[...] = jnp.zeros_like(s_sc)
        t_sc[...] = jnp.zeros_like(t_sc)

    cosine = cosine_ref[...].astype(jnp.float32)     # (Bt, Ct)
    label = label_ref[...]                           # (Bt, 1) int32
    bt, ct = cosine.shape

    # global class ids covered by this tile
    c_start = c_idx * c_tile
    cls = c_start + jax.lax.broadcasted_iota(jnp.int32, (bt, ct), 1)
    one_hot = cls == label                           # (Bt, Ct) bool

    # -------- margin transform only on the target logit ---------------------
    # cos_t is the target-class cosine if the target column lies in this tile,
    # else 0 (harmless: the where() below then never selects phi_t).
    cos_t = jnp.sum(jnp.where(one_hot, cosine, 0.0), axis=1, keepdims=True)
    sine_t = jnp.sqrt(jnp.maximum(1.0 - cos_t * cos_t, 0.0))  # clamp: no NaN
    phi_t = cos_t * cos_m - sine_t * sin_m
    if easy_margin:
        phi_t = jnp.where(cos_t > 0.0, phi_t, cos_t)
    else:
        phi_t = jnp.where(cos_t > th, phi_t, cos_t - mmm)

    # scaled logits for this tile (phi only at the target column)
    output = jnp.where(one_hot, phi_t, cosine) * scale        # (Bt, Ct)

    # accumulate the target logit (scale*phi) without another B x C reduce
    in_tile = jnp.logical_and(label >= c_start, label < c_start + ct)
    t_sc[...] += jnp.where(in_tile, phi_t * scale, 0.0)

    # -------- online logsumexp update ---------------------------------------
    tile_max = jnp.max(output, axis=1, keepdims=True)
    m_new = jnp.maximum(m_sc[...], tile_max)
    alpha = jnp.exp(m_sc[...] - m_new)
    s_sc[...] = alpha * s_sc[...] + jnp.sum(jnp.exp(output - m_new),
                                            axis=1, keepdims=True)
    m_sc[...] = m_new

    # -------- finalize: per-example cross-entropy ----------------------------
    @pl.when(c_idx == n_c - 1)
    def _():
        loss_ref[...] = m_sc[...] + jnp.log(s_sc[...]) - t_sc[...]


def aam_loss(cosine, label, margin=0.2, scale=32.0, easy_margin=False,
             b_tile=None, c_tile=None):
    """cosine: [B, C] float (f32 or bf16), label: [B] int -> scalar f32 loss."""
    B, C = cosine.shape

    # Margin-derived constants (the module's `update(margin)`).
    cos_m = math.cos(margin)
    sin_m = math.sin(margin)
    th = math.cos(math.pi - margin)
    mmm = 1.0 + math.cos(math.pi - margin)

    # Tile sizes: >=128 lanes, <= ~1 MiB f32 per buffer (fits v5e/v6e/v7x
    # scoped-VMEM defaults with double buffering).
    if c_tile is None:
        c_tile = min(_round_up(C, 128), 2048)
    if b_tile is None:
        b_tile = min(_round_up(B, 8), 128)

    B_pad = _round_up(B, b_tile)
    C_pad = _round_up(C, c_tile)

    if C_pad != C:
        # pad classes with a very negative cosine -> exp underflows to 0
        cosine = jnp.pad(cosine, ((0, 0), (0, C_pad - C)),
                         constant_values=-1e4)
    if B_pad != B:
        cosine = jnp.pad(cosine, ((0, B_pad - B), (0, 0)))
        label = jnp.pad(label, (0, B_pad - B))

    label2d = label.astype(jnp.int32).reshape(B_pad, 1)

    kernel = functools.partial(
        _aam_loss_kernel,
        c_tile=c_tile,
        cos_m=cos_m, sin_m=sin_m, th=th, mmm=mmm,
        scale=float(scale), easy_margin=bool(easy_margin),
    )

    grid = (B_pad // b_tile, C_pad // c_tile)

    per_example = pl.pallas_call(
        kernel,
        out_shape=jax.ShapeDtypeStruct((B_pad, 1), jnp.float32),
        grid_spec=pltpu.PrefetchScalarGridSpec(
            num_scalar_prefetch=0,
            grid=grid,
            in_specs=[
                # cosine: streamed over class tiles
                pl.BlockSpec((b_tile, c_tile), lambda b, c: (b, c)),
                # labels: same block for every class tile (resident in VMEM)
                pl.BlockSpec((b_tile, 1), lambda b, c: (b, 0)),
            ],
            # per-example loss, resident across the class (reduction) axis
            out_specs=pl.BlockSpec((b_tile, 1), lambda b, c: (b, 0)),
            scratch_shapes=[pltpu.VMEM((b_tile, 1), jnp.float32),   # running max
                            pltpu.VMEM((b_tile, 1), jnp.float32),   # running sum
                            pltpu.VMEM((b_tile, 1), jnp.float32)],  # target logit
        ),
        compiler_params=pltpu.CompilerParams(
            dimension_semantics=("parallel", "arbitrary")),
    )(cosine, label2d)

    # tiny final mean in plain JAX (drop padded batch rows)
    return jnp.mean(per_example[:B, 0])


def _aam_loss_ref(cosine, label, margin=0.2, scale=32.0, easy_margin=False):
    """Pure-JAX reference matching the PyTorch module."""
    cosine = cosine.astype(jnp.float32)
    cos_m = math.cos(margin)
    sin_m = math.sin(margin)
    th = math.cos(math.pi - margin)
    mmm = 1.0 + math.cos(math.pi - margin)
    sine = jnp.sqrt(jnp.maximum(1.0 - cosine * cosine, 0.0))
    phi = cosine * cos_m - sine * sin_m
    if easy_margin:
        phi = jnp.where(cosine > 0.0, phi, cosine)
    else:
        phi = jnp.where(cosine > th, phi, cosine - mmm)
    one_hot = jax.nn.one_hot(label, cosine.shape[1], dtype=cosine.dtype)
    output = (one_hot * phi + (1.0 - one_hot) * cosine) * scale
    lse = jax.scipy.special.logsumexp(output, axis=1)
    tgt = jnp.take_along_axis(output, label[:, None].astype(jnp.int32),
                              axis=1)[:, 0]
    return jnp.mean(lse - tgt)


if __name__ == "__main__":
    key = jax.random.PRNGKey(0)
    k_cos, k_lab = jax.random.split(key)

    batch, num_classes = 16, 256
    # cosine similarities live in [-1, 1]
    cosine = jax.random.uniform(k_cos, (batch, num_classes),
                                dtype=jnp.float32, minval=-1.0, maxval=1.0)
    label = jax.random.randint(k_lab, (batch,), 0, num_classes,
                               dtype=jnp.int32)

    # small tiles to exercise the multi-tile class grid + online logsumexp
    loss = aam_loss(cosine, label, margin=0.2, scale=32.0, easy_margin=False,
                    b_tile=8, c_tile=128)
    jax.block_until_ready(loss)

    ref = _aam_loss_ref(cosine, label, margin=0.2, scale=32.0,
                        easy_margin=False)
    np.testing.assert_allclose(np.asarray(loss), np.asarray(ref),
                               rtol=1e-4, atol=1e-4)

    print("KERNEL_OK")
</pallas_src>

<mosaic_0001>
module attributes {stable_mosaic.version = 11 : i64} {
  func.func @_aam_loss_kernel(%arg0: i32, %arg1: i32, %arg2: memref<8x128xf32, #tpu.memory_space<vmem>>, %arg3: memref<8x1xi32, #tpu.memory_space<vmem>>, %arg4: memref<8x1xf32, #tpu.memory_space<vmem>>, %arg5: memref<8x1xf32, #tpu.memory_space<vmem>>, %arg6: memref<8x1xf32, #tpu.memory_space<vmem>>, %arg7: memref<8x1xf32, #tpu.memory_space<vmem>>) attributes {dimension_semantics = [#tpu.dimension_semantics<parallel>, #tpu.dimension_semantics<arbitrary>], iteration_bounds = array<i64: 2, 2>, scalar_prefetch = 0 : i64, scratch_operands = 3 : i64, tpu.core_type = #tpu.core_type<tc>, window_params = [{transform_indices = @transform_0, window_bounds = array<i64: 8, 128>}, {transform_indices = @transform_1, window_bounds = array<i64: 8, 1>}, {transform_indices = @transform_2, window_bounds = array<i64: 8, 1>}]} {
    %c0_i32 = arith.constant 0 : i32
    %0 = arith.cmpi eq, %arg1, %c0_i32 : i32
    %1 = arith.extui %0 : i1 to i32
    %c0_i32_0 = arith.constant 0 : i32
    %2 = arith.cmpi ne, %1, %c0_i32_0 : i32
    scf.if %2 {
      %cst_32 = arith.constant 0xFF800000 : f32
      %69 = vector.broadcast %cst_32 : f32 to vector<8x1xf32>
      %c0_33 = arith.constant 0 : index
      %c0_34 = arith.constant 0 : index
      %70 = vector.load %arg5[%c0_33, %c0_34] : memref<8x1xf32, #tpu.memory_space<vmem>>, vector<8x1xf32>
      tpu.vector_store %arg5[%c0_33, %c0_34], %69 {strides = array<i32>} : memref<8x1xf32, #tpu.memory_space<vmem>>, vector<8x1xf32>,
      %cst_35 = arith.constant 0.000000e+00 : f32
      %71 = vector.broadcast %cst_35 : f32 to vector<8x1xf32>
      %c0_36 = arith.constant 0 : index
      %c0_37 = arith.constant 0 : index
      %72 = vector.load %arg6[%c0_36, %c0_37] : memref<8x1xf32, #tpu.memory_space<vmem>>, vector<8x1xf32>
      tpu.vector_store %arg6[%c0_36, %c0_37], %71 {strides = array<i32>} : memref<8x1xf32, #tpu.memory_space<vmem>>, vector<8x1xf32>,
      %cst_38 = arith.constant 0.000000e+00 : f32
      %73 = vector.broadcast %cst_38 : f32 to vector<8x1xf32>
      %c0_39 = arith.constant 0 : index
      %c0_40 = arith.constant 0 : index
      %74 = vector.load %arg7[%c0_39, %c0_40] : memref<8x1xf32, #tpu.memory_space<vmem>>, vector<8x1xf32>
      tpu.vector_store %arg7[%c0_39, %c0_40], %73 {strides = array<i32>} : memref<8x1xf32, #tpu.memory_space<vmem>>, vector<8x1xf32>,
    } else {
    }
    %c0 = arith.constant 0 : index
    %c0_1 = arith.constant 0 : index
    %3 = vector.load %arg2[%c0, %c0_1] : memref<8x128xf32, #tpu.memory_space<vmem>>, vector<8x128xf32>
    %c0_2 = arith.constant 0 : index
    %c0_3 = arith.constant 0 : index
    %4 = vector.load %arg3[%c0_2, %c0_3] : memref<8x1xi32, #tpu.memory_space<vmem>>, vector<8x1xi32>
    %c128_i32 = arith.constant 128 : i32
    %5 = arith.muli %arg1, %c128_i32 : i32
    %6 = tpu.iota {dimensions = array<i32: 1>} : vector<8x128xi32>
    %7 = vector.broadcast %5 : i32 to vector<8x128xi32>
    %8 = arith.addi %7, %6 : vector<8x128xi32>
    %9 = vector.broadcast %4 : vector<8x1xi32> to vector<8x128xi32>
    %10 = arith.cmpi eq, %8, %9 : vector<8x128xi32>
    %cst = arith.constant 0.000000e+00 : f32
    %11 = vector.broadcast %cst : f32 to vector<8x128xf32>
    %12 = arith.select %10, %3, %11 : vector<8x128xi1>, vector<8x128xf32>
    %cst_4 = arith.constant dense<0.000000e+00> : vector<8xf32>
    %13 = vector.multi_reduction <add>, %12, %cst_4 [1] : vector<8x128xf32> to vector<8xf32>
    %14 = vector.shape_cast %13 : vector<8xf32> to vector<8x1xf32>
    %15 = arith.mulf %14, %14 : vector<8x1xf32>
    %cst_5 = arith.constant 1.000000e+00 : f32
    %16 = vector.broadcast %cst_5 : f32 to vector<8x1xf32>
    %17 = arith.subf %16, %15 : vector<8x1xf32>
    %cst_6 = arith.constant 0.000000e+00 : f32
    %18 = vector.broadcast %cst_6 : f32 to vector<8x1xf32>
    %19 = arith.maximumf %17, %18 : vector<8x1xf32>
    %20 = math.sqrt %19 : vector<8x1xf32>
    %cst_7 = arith.constant 0.980066597 : f32
    %21 = vector.broadcast %cst_7 : f32 to vector<8x1xf32>
    %22 = arith.mulf %14, %21 : vector<8x1xf32>
    %cst_8 = arith.constant 0.198669329 : f32
    %23 = vector.broadcast %cst_8 : f32 to vector<8x1xf32>
    %24 = arith.mulf %20, %23 : vector<8x1xf32>
    %25 = arith.subf %22, %24 : vector<8x1xf32>
    %cst_9 = arith.constant -0.980066597 : f32
    %26 = vector.broadcast %cst_9 : f32 to vector<8x1xf32>
    %27 = arith.cmpf ogt, %14, %26 : vector<8x1xf32>
    %cst_10 = arith.constant 0.019933423 : f32
    %28 = vector.broadcast %cst_10 : f32 to vector<8x1xf32>
    %29 = arith.subf %14, %28 : vector<8x1xf32>
    %30 = arith.select %27, %25, %29 : vector<8x1xi1>, vector<8x1xf32>
    %31 = vector.shape_cast %30 : vector<8x1xf32> to vector<8x1xf32>
    %32 = vector.broadcast %31 : vector<8x1xf32> to vector<8x128xf32>
    %33 = arith.select %10, %32, %3 : vector<8x128xi1>, vector<8x128xf32>
    %cst_11 = arith.constant 3.200000e+01 : f32
    %34 = vector.broadcast %cst_11 : f32 to vector<8x128xf32>
    %35 = arith.mulf %33, %34 : vector<8x128xf32>
    %36 = vector.broadcast %5 : i32 to vector<8x1xi32>
    %37 = arith.cmpi sge, %4, %36 : vector<8x1xi32>
    %c128_i32_12 = arith.constant 128 : i32
    %38 = arith.addi %5, %c128_i32_12 : i32
    %39 = vector.broadcast %38 : i32 to vector<8x1xi32>
    %40 = arith.cmpi slt, %4, %39 : vector<8x1xi32>
    %41 = arith.andi %37, %40 : vector<8x1xi1>
    %c0_13 = arith.constant 0 : index
    %c0_14 = arith.constant 0 : index
    %42 = vector.load %arg7[%c0_13, %c0_14] : memref<8x1xf32, #tpu.memory_space<vmem>>, vector<8x1xf32>
    %cst_15 = arith.constant 3.200000e+01 : f32
    %43 = vector.broadcast %cst_15 : f32 to vector<8x1xf32>
    %44 = arith.mulf %30, %43 : vector<8x1xf32>
    %cst_16 = arith.constant 0.000000e+00 : f32
    %45 = vector.broadcast %cst_16 : f32 to vector<8x1xf32>
    %46 = arith.select %41, %44, %45 : vector<8x1xi1>, vector<8x1xf32>
    %47 = arith.addf %42, %46 : vector<8x1xf32>
    %c0_17 = arith.constant 0 : index
    %c0_18 = arith.constant 0 : index
    %48 = vector.load %arg7[%c0_17, %c0_18] : memref<8x1xf32, #tpu.memory_space<vmem>>, vector<8x1xf32>
    tpu.vector_store %arg7[%c0_17, %c0_18], %47 {strides = array<i32>} : memref<8x1xf32, #tpu.memory_space<vmem>>, vector<8x1xf32>,
    %cst_19 = arith.constant dense<0xFF800000> : vector<8xf32>
    %49 = vector.multi_reduction <maximumf>, %35, %cst_19 [1] : vector<8x128xf32> to vector<8xf32>
    %50 = vector.shape_cast %49 : vector<8xf32> to vector<8x1xf32>
    %c0_20 = arith.constant 0 : index
    %c0_21 = arith.constant 0 : index
    %51 = vector.load %arg5[%c0_20, %c0_21] : memref<8x1xf32, #tpu.memory_space<vmem>>, vector<8x1xf32>
    %52 = arith.maximumf %51, %50 : vector<8x1xf32>
    %c0_22 = arith.constant 0 : index
    %c0_23 = arith.constant 0 : index
    %53 = vector.load %arg5[%c0_22, %c0_23] : memref<8x1xf32, #tpu.memory_space<vmem>>, vector<8x1xf32>
    %54 = arith.subf %53, %52 : vector<8x1xf32>
    %55 = math.exp %54 : vector<8x1xf32>
    %c0_24 = arith.constant 0 : index
    %c0_25 = arith.constant 0 : index
    %56 = vector.load %arg6[%c0_24, %c0_25] : memref<8x1xf32, #tpu.memory_space<vmem>>, vector<8x1xf32>
    %57 = arith.mulf %55, %56 : vector<8x1xf32>
    %58 = vector.broadcast %52 : vector<8x1xf32> to vector<8x128xf32>
    %59 = arith.subf %35, %58 : vector<8x128xf32>
    %60 = math.exp %59 : vector<8x128xf32>
    %cst_26 = arith.constant dense<0.000000e+00> : vector<8xf32>
    %61 = vector.multi_reduction <add>, %60, %cst_26 [1] : vector<8x128xf32> to vector<8xf32>
    %62 = vector.shape_cast %61 : vector<8xf32> to vector<8x1xf32>
    %63 = arith.addf %57, %62 : vector<8x1xf32>
    %c0_27 = arith.constant 0 : index
    %c0_28 = arith.constant 0 : index
    %64 = vector.load %arg6[%c0_27, %c0_28] : memref<8x1xf32, #tpu.memory_space<vmem>>, vector<8x1xf32>
    tpu.vector_store %arg6[%c0_27, %c0_28], %63 {strides = array<i32>} : memref<8x1xf32, #tpu.memory_space<vmem>>, vector<8x1xf32>,
    %c0_29 = arith.constant 0 : index
    %c0_30 = arith.constant 0 : index
    %65 = vector.load %arg5[%c0_29, %c0_30] : memref<8x1xf32, #tpu.memory_space<vmem>>, vector<8x1xf32>
    tpu.vector_store %arg5[%c0_29, %c0_30], %52 {strides = array<i32>} : memref<8x1xf32, #tpu.memory_space<vmem>>, vector<8x1xf32>,
    %c1_i32 = arith.constant 1 : i32
    %66 = arith.cmpi eq, %arg1, %c1_i32 : i32
    %67 = arith.extui %66 : i1 to i32
    %c0_i32_31 = arith.constant 0 : i32
    %68 = arith.cmpi ne, %67, %c0_i32_31 : i32
    scf.if %68 {
      %c0_32 = arith.constant 0 : index
      %c0_33 = arith.constant 0 : index
      %69 = vector.load %arg5[%c0_32, %c0_33] : memref<8x1xf32, #tpu.memory_space<vmem>>, vector<8x1xf32>
      %c0_34 = arith.constant 0 : index
      %c0_35 = arith.constant 0 : index
      %70 = vector.load %arg6[%c0_34, %c0_35] : memref<8x1xf32, #tpu.memory_space<vmem>>, vector<8x1xf32>
      %71 = math.log %70 : vector<8x1xf32>
      %72 = arith.addf %69, %71 : vector<8x1xf32>
      %c0_36 = arith.constant 0 : index
      %c0_37 = arith.constant 0 : index
      %73 = vector.load %arg7[%c0_36, %c0_37] : memref<8x1xf32, #tpu.memory_space<vmem>>, vector<8x1xf32>
      %74 = arith.subf %72, %73 : vector<8x1xf32>
      %c0_38 = arith.constant 0 : index
      %c0_39 = arith.constant 0 : index
      %75 = vector.load %arg4[%c0_38, %c0_39] : memref<8x1xf32, #tpu.memory_space<vmem>>, vector<8x1xf32>
      tpu.vector_store %arg4[%c0_38, %c0_39], %74 {strides = array<i32>} : memref<8x1xf32, #tpu.memory_space<vmem>>, vector<8x1xf32>,
    } else {
    }
    return
  }
  func.func @transform_0(%arg0: i32, %arg1: i32) -> (i32, i32) {
    %c0_i32 = arith.constant 0 : i32
    return %arg0, %arg1 : i32, i32
  }
  func.func @transform_1(%arg0: i32, %arg1: i32) -> (i32, i32) {
    %c0_i32 = arith.constant 0 : i32
    %c0_i32_0 = arith.constant 0 : i32
    return %arg0, %c0_i32 : i32, i32
  }
  func.func @transform_2(%arg0: i32, %arg1: i32) -> (i32, i32) {
    %c0_i32 = arith.constant 0 : i32
    %c0_i32_0 = arith.constant 0 : i32
    return %arg0, %c0_i32 : i32, i32
  }
}

</mosaic_0001>

<bundles_post_ra>
// kernel: tpu_custom_call.1
= control target key start
LH: loop header
LB: loop body
LE: loop exit
PB: predicated region body
PF: predicated region fallthrough
CT: control target
= control target key end

     0   :  { %7 = vsyncpa [#allocation6], 0  ;;  %s761_s0 = inlined_call_operand.hbm [shape: f32[16,256], index: 0, kind: input, shape index: {}]   ;;  %s762_s1 = inlined_call_operand.vmem [shape: s32[16,1], index: 1, kind: input, shape index: {}]   ;;  %s763_s2 = inlined_call_operand.vmem [shape: f32[16,1], index: 2, kind: output, shape index: {}]  }
   0x1   :  { %9 = vsyncpa [#allocation6 + $0x1], 0  ;;  %s585_s9 = smov 0   ;;  %s587_s10 = smov 0  }
   0x2   :  { %s589_s11 = smov 0   ;;  %s591_s12 = smov 0  }
   0x3   :  { %s593_s13 = smov 0   ;;  %s595_s14 = smov 0  }
   0x4   :  { %s597_s15 = smov 0   ;;  %s599_s16 = smov 0  }
   0x5 LB: > { %s367_s17 = sadd.s32 4294967295, %s564_s16   ;;  %s24_s18 = sadd.s32 1, %s556_s14  ;;  %s564_s16 = sphi %s599_s16, %s15_s16   ;;  %s560_s15 = sphi %s597_s15, %s777_s15   ;;  %s556_s14 = sphi %s595_s14, %s776_s14   ;;  %s552_s13 = sphi %s593_s13, %s775_s13   ;;  %s548_s12 = sphi %s591_s12, %s774_s12   ;;  %s544_s11 = sphi %s589_s11, %s773_s11   ;;  %s540_s10 = sphi %s587_s10, %s772_s10   ;;  %s536_s9 = sphi %s585_s9, %s771_s9  }
   0x6   : > { %p25_p0 = scmp.ge.s32.totalorder %s24_s18, 2  ;;  %s27_s19 = sadd.s32 1, %s560_s15 }
   0x7   : > { %s36_s20 = sadd.s32 1, %s544_s11  ;;  %p43_p1 = scmp.ne.s32.totalorder %s544_s11, %s540_s10 }
   0x8   : > { %s779_s18 = smov (%p25_p0, %s24_s18), 0  ;;  %s781_s19 = smov (!%p25_p0, %s27_s19), %s560_s15 }
   0x9   : > { %s32_s21 = ssub.s32 %s556_s14, %s779_s18  ;;  %p44_p2 = scmp.eq.s32.totalorder %s564_s16, 0 }
   0xa   : > { %p29_p3 = scmp.ge.s32.totalorder %s781_s19, 2  ;;  %p49_p4 = scmp.ne.s32.totalorder %s540_s10, %s536_s9 }
   0xb   : > { %p636_p5 = por %p44_p2, %p43_p1  ;;  %p50_p6 = scmp.eq.s32.totalorder %s367_s17, 0 }
   0xc   : > { %s783_s19 = smov (%p29_p3, %s781_s19), 0  ;;  %p390_p8 = scmp.lt.s32.totalorder %s564_s16, 4 }
   0xd   : > { %p642_p7 = por %p50_p6, %p49_p4  ;;  %s31_s24 = ssub.s32 %s560_s15, %s783_s19 }
   0xe   : > { %s33_s25 = sor.u32 %s32_s21, %s31_s24  ;;  %s125_s26 = sand.u32 1, %s544_s11  }
   0xf   : > { %p34_p9 = scmp.eq.s32.totalorder %s33_s25, 0  ;;  %s371_s27 = sshll.u32 %s125_s26, 3 }
  0x10   : > { %s372_s28 = sshll.u32 %s560_s15, 1  ;;  %s129_s4 = scalar_lea.vmem [#allocation5], %s371_s27 }
  0x11   : > { %s652_s29 = scalar_select %p34_p9, %s544_s11, %s36_s20  }
  0x12   : > { %s134_s30 = sadd.s32 %s556_s14, %s372_s28  ;;  %s138_s5 = sshll.u32 %s129_s4, 4  ;;  %s660_s5 = int_to_ptr.vmem [resolvable:$true] %s138_s5 }
  0x13   : > { %s373_s3 = sshll.u32 %s134_s30, 7  ;;  %p666_p10 = pnand %p390_p8, %p636_p5 }
  0x14   : > { %s658_s8 = scalar_lea.hbm %s761_s0, %s373_s3  ;;  %s126_s17 = scalar_lea.sflag [#allocation6], %s125_s26 }
  0x15   : > { %s468_s20 = scalar_lea.hbm %s658_s8, 128  ;;  %p470_p0 = pneg %p666_p10 }
  0x16   : > { %p469_p13 = scmp.ne.s32.totalorder %s658_s8, %s468_s20  ;;  %s473_s24 = scalar_lea.hbm %s761_s0, 512 }
  0x17   : > { %p474_p3 = scmp.lt.u32.totalorder %s658_s8, %s761_s0  ;;  %p475_p4 = scmp.lt.u32.totalorder %s473_s24, %s468_s20 }
  0x18   : > { %p471_p1 = pnand %p470_p0, %p469_p13  ;;  %p477_p6 = scmp.lt.u32.totalorder %s468_s20, %s658_s8 }
  0x19   : > { %p476_p5 = por %p475_p4, %p474_p3 }
  0x1a   : > { %p472_p2 = pneg %p471_p1 }
  0x1b   : > { %p478_p8 = por %p477_p6, %p476_p5 }
  0x1d   : > { %p479_p9 = pnand %p478_p8, %p472_p2 }
  0x1f   : > { %482 = shalt.err (!%p479_p9)
}
  0x20   : > { %s483_s26 = scalar_lea.vmem %s660_s5, 128  ;;  %s566_s28 = smov [#allocation5]  }
  0x21   : > { %p484_p13 = scmp.ne.s32.totalorder %s660_s5, %s483_s26  ;;  %s488_s30 = sshll.u32 %s566_s28, 4  ;;  %s489_s30 = int_to_ptr.vmem [resolvable:$false] %s488_s30 }
  0x22   : > { %s490_s3 = scalar_lea.vmem %s489_s30, 256  ;;  %p491_p12 = scmp.lt.s32.totalorder %s660_s5, %s489_s30 }
  0x23   : > { %p486_p1 = pnand %p484_p13, %p470_p0  ;;  %p492_p3 = scmp.lt.s32.totalorder %s490_s3, %s483_s26 }
  0x25   : > { %p487_p11 = pneg %p486_p1  ;;  %p493_p4 = por %p492_p3, %p491_p12 }
  0x27   : > { %p494_p5 = pnand %p493_p4, %p487_p11 }
  0x29   : > { %497 = shalt.err (!%p494_p5)
}
  0x2a   : > { %389 = dma.hbm_to_vmem [thread:$0]  (!%p666_p10), %s658_s8, 128, %s660_s5, %s126_s17  }
  0x2b   : > { %p767_p2 = scmp.lt.s32.totalorder %s564_s16, 5  ;;  %p768_p6 = scmp.ge.s32.totalorder %s564_s16, 1 }
  0x2d   : > { %p151_p0 = pnand %p768_p6, %p767_p2 }
  0x2e   : > { %s156_s4 = sand.u32 (!%p151_p0), 1, %s540_s10  }
  0x2f   : > { %154 = sbr.rel (%p151_p0) target bundleno = 824 (0x338), region = 28  ;;  %s702_s6 = sshll.u32 (!%p151_p0), %s156_s4, 3 }
  0x30   : > { %s157_s7 = scalar_lea.sflag (!%p151_p0), [#allocation6], %s156_s4  ;;  %s160_s20 = scalar_lea.vmem (!%p151_p0), [#allocation5], %s702_s6 }
  0x36   : > { %531 = dma.done.wait (%p642_p7), %s157_s7, 128  }
  0x37   : > { %533 = vsyncadd (%p642_p7), %s157_s7, 4294967168  ;;  %p184_p10 = scmp.lt.s32.totalorder %s552_s13, 1  ;;  %p378_p11 = scmp.ne.s32.totalorder %s548_s12, 0 }
  0x38   : > { %vm196_vm0 = vcmask (!%p378_p11), 7168   ;;  %v567_v0 = vmov (!%p378_p11), -inf   ;;  %v568_v1 = vmov (!%p378_p11), 0.0  }
  0x39   : > { %s785_s13 = smov (!%p184_p10, %s552_s13), 1  ;;  %195 = sbr.rel (%p378_p11) target bundleno = 64 (0x40), region = 36 }
  0x3a   : > { %s376_s5 = sshll.u32 %s785_s13, 3  ;;  %197 = vst.msk [vmem:[#allocation2] sm:$0xff] (!%p378_p11), %vm196_vm0, %v567_v0  ;;  %198 = vst.msk [vmem:[#allocation3] sm:$0xff] (!%p378_p11), %vm196_vm0, %v568_v1 }
  0x3b   : > { %s187_s17 = scalar_lea.vmem %s762_s1, %s376_s5  ;;  %s717_s24 = scalar_lea.vmem %s763_s2, %s376_s5  ;;  %199 = vst.msk [vmem:[#allocation4] sm:$0xff] (!%p378_p11), %vm196_vm0, %v568_v1 }
  0x40 PF: > { %v201_v2 = vld [vmem:[%s187_s17] sm:$0xff]  ;;  %s379_s13 = sshll.u32 %s548_s12, 7  ;;  %v569_v3 = vmov 0   ;;  %v203_v7 = vlaneseq  ;;  %vm241_vm8 = vcmask 7168   ;;  %p381_p7 = scmp.ne.s32.totalorder %s548_s12, 1 }
  0x41   : > { %458 = vset.pattern.permute.xlu0 %v569_v3  ;;  %s233_s23 = sadd.s32 128, %s379_s13  ;;  %v205_v4 = vstv %s379_s13  ;;  %459 = vset.pattern.permute.xlu1 %v569_v3  ;;  %v200_v10 = vld [vmem:[%s160_s20] sm:$0xff]  ;;  %v250_v43 = vld [vmem:[#allocation3] sm:$0xff] }
  0x42   : > { %v234_v5 = vstv %s233_s23  ;;  %208 = vperm.xlu0 %458, %v201_v2   ;;  %vm232_vm1 = vcmp.ge.s32.totalorder %v201_v2, %v205_v4  ;;  %v204_v8 = vand.u32 127, %v203_v7  ;;  %v237_v28 = vld [vmem:[#allocation4] sm:$0xff]  ;;  %v245_v33 = vld [vmem:[#allocation2] sm:$0xff] }
  0x43   : > { %vm235_vm2 = vcmp.lt.s32.totalorder %v201_v2, %v234_v5 }
  0x44   : > { %vm721_vm3 = vmand %vm232_vm1, %vm235_vm2  ;;  %v206_v9 = vadd.s32 %v205_v4, %v204_v8 }
  0xc1   : > { %v209_v11 = vpop.permute.xlu0 %208 }
  0xc2   : > { %vm210_vm4 = vcmp.eq.s32.totalorder %v206_v9, %v209_v11 }
  0xc3   : > { %v211_v12 = vsel %vm210_vm4, %v200_v10, 0.0 }
  0xc4   : > { %212 = vadd.xlane.f32.xlu0 %v211_v12 }
 0x151   : > { %v213_v13 = vpop.xlane.xlu0 %212 }
 0x152   : > { %v214_v14 = vmul.f32 %v213_v13, %v213_v13  ;;  %v224_v22 = vmul.f32 0.9800666, %v213_v13  ;;  %v380_v25 = vadd.f32 -0.019933423, %v213_v13  ;;  %vm227_vm7 = vcmp.gt.f32.partialorder %v213_v13, -0.9800666 }
 0x154   : > { %v215_v15 = vsub.f32 1.0, %v214_v14 }
 0x156   : > { %v216_v16 = vmax.f32 %v215_v15, 0.0 }
 0x158   : > { %460 = vrsqrt.f32 %v216_v16  ;;  %vm219_vm5 = vcmp.eq.f32.partialorder %v216_v16, inf  ;;  %v222_v19 = vand.u32 2147483648, %v216_v16  ;;  %vm221_vm6 = vcmp.eq.f32.partialorder %v216_v16, 0.0 }
 0x162   : > { %v461_v17 = vpop.eup %460 }
 0x163   : > { %v218_v18 = vmul.f32 %v461_v17, %v216_v16 }
 0x165   : > { %v220_v20 = vsel %vm219_vm5, %v216_v16, %v218_v18 }
 0x166   : > { %v223_v21 = vsel %vm221_vm6, %v222_v19, %v220_v20 }
 0x167   : > { %v225_v23 = vmul.f32 0.19866933, %v223_v21 }
 0x169   : > { %v226_v24 = vsub.f32 %v224_v22, %v225_v23 }
 0x16b   : > { %v229_v26 = vsel %vm227_vm7, %v226_v24, %v380_v25 }
 0x16c   : > { %v230_v27 = vsel %vm210_vm4, %v229_v26, %v200_v10  ;;  %v238_v29 = vmul.f32 32.0, %v229_v26 }
 0x16d   : > { %v231_v30 = vmul.f32 32.0, %v230_v27 }
 0x16e   : > { %v239_v31 = vsel %vm721_vm3, %v238_v29, 0.0 }
 0x16f   : > { %v240_v32 = vadd.f32 %v239_v31, %v237_v28  ;;  %243 = vmax.xlane.f32.xlu1 %v231_v30 }
 0x171   : > { %242 = vst.msk [vmem:[#allocation4] sm:$0xff] %vm241_vm8, %v240_v32 }
 0x178   : > { %v274_v51 = vld [vmem:[#allocation4] sm:$0xff] (!%p381_p7) }
 0x1fc   : > { %v244_v34 = vpop.xlane.xlu1 %243 }
 0x1fd   : > { %v246_v35 = vmax.f32 %v245_v33, %v244_v34 }
 0x1ff   : > { %v247_v36 = vsub.f32 %v245_v33, %v246_v35  ;;  %264 = vst.msk [vmem:[#allocation2] sm:$0xff] %vm241_vm8, %v246_v35  ;;  %254 = vperm.xlu1 %459, %v246_v35  }
 0x201   : > { %v248_v41 = vmul.f32 1.442695, %v247_v36 }
 0x206   : > { %v269_v49 = vld [vmem:[#allocation2] sm:$0xff] (!%p381_p7) }
 0x27e   : > { %v255_v37 = vpop.permute.xlu1 %254 }
 0x27f   : > { %v257_v38 = vsub.f32 %v231_v30, %v255_v37 }
 0x281   : > { %v258_v39 = vmul.f32 1.442695, %v257_v38 }
 0x283   : > { %462 = vpow2.f32 %v258_v39 }
 0x284   : > { %464 = vpow2.f32 %v248_v41 }
 0x28d   : > { %v463_v40 = vpop.eup %462 }
 0x28e   : > { %260 = vadd.xlane.f32.xlu1 %v463_v40  ;;  %v465_v42 = vpop.eup %464 }
 0x28f   : > { %v251_v44 = vmul.f32 %v465_v42, %v250_v43 }
 0x318   : > { %268 = sbr.rel (%p381_p7) target bundleno = 824 (0x338), region = 40 }
 0x31b   : > { %v261_v45 = vpop.xlane.xlu1 %260 }
 0x31c   : > { %v262_v46 = vadd.f32 %v261_v45, %v251_v44 }
 0x31e   : > { %263 = vst.msk [vmem:[#allocation3] sm:$0xff] %vm241_vm8, %v262_v46 }
 0x325   : > { %v270_v47 = vld [vmem:[#allocation3] sm:$0xff] }
 0x326   : > { %466 = vlog2.f32 %v270_v47 }
 0x330   : > { %v467_v48 = vpop.eup %466 }
 0x331   : > { %v272_v50 = vmul.f32 0.6931472, %v467_v48 }
 0x333   : > { %v273_v52 = vadd.f32 %v272_v50, %v269_v49 }
 0x335   : > { %v275_v53 = vsub.f32 %v273_v52, %v274_v51 }
 0x337   : > { %276 = vst.msk [vmem:[%s717_s24] sm:$0xff] %vm241_vm8, %v275_v53 }
 0x338 PF: > { %s15_s16 = sadd.s32 1, %s564_s16   ;;  %s771_s9 = smov %s540_s10 }
 0x339   : > { %p12_p12 = scmp.ge.s32.totalorder %s15_s16, 6   ;;  %s772_s10 = smov %s544_s11 }
 0x33a   : > { %s773_s11 = smov %s652_s29  ;;  %s774_s12 = smov %s556_s14 }
 0x33b   : > { %s775_s13 = smov %s560_s15  ;;  %s776_s14 = smov %s779_s18 }
 0x33c   : > { %s777_s15 = smov %s783_s19  ;;  %14 = sbr.rel (!%p12_p12) target bundleno = 5 (0x5), region = 79 }
 0x343   :  { %296 = vsyncpa [#allocation6], 1 }
 0x344   :  { %298 = vsyncpa [#allocation6 + $0x1], 1 }

</bundles_post_ra>
